<compile_context>
chip_gen: v6e
topology: v6e:2x2x1
jax: 0.10.0
libtpu: 0.0.40
codegen_flags: <defaults>
</compile_context>

<pallas_src>
import functools
import math

import jax
import jax.numpy as jnp
import numpy as np
from jax.experimental import pallas as pl
from jax.experimental.pallas import tpu as pltpu

LANE = 1024                      # lane (last) dim of the 2-D view; multiple of 128
_LN10 = float(np.log(10.0))


def _default_row_tile():
    """Rows per block: 1024 on v6e/v7x (fits 32 MiB scoped VMEM), 512 elsewhere."""
    try:
        kind = jax.devices()[0].device_kind.lower()
    except Exception:
        return 512
    if ("v6" in kind) or ("v7" in kind):
        return 1024
    return 512


def _vol_kernel(base_seg_ref, base_rem_ref, x_ref, o_ref, *,
                vol_ceil, db_step, n_db, seg_samples, lane, row_tile, per_row):
    """One block = row_tile x lane contiguous samples of the waveform.

    base_seg_ref / base_rem_ref (scalar-prefetched, f32, one entry per grid
    block) hold the exact decomposition of the block's first absolute sample
    index:  block_base = base_seg * seg_samples + base_rem,  base_rem < seg.
    """
    i = pl.program_id(0)
    base_seg = base_seg_ref[i]            # f32 scalar, exact (< 2^24 asserted)
    base_rem = base_rem_ref[i]            # f32 scalar, < seg_samples

    s = jnp.float32(seg_samples)
    inv_s = jnp.float32(1.0 / seg_samples)
    n_db_f = jnp.float32(n_db)
    k = jnp.float32(0.05 * _LN10)
    ceil_f = jnp.float32(vol_ceil)
    step_f = jnp.float32(db_step)

    # Small iotas: (rt,1) over sublanes, (1,lane) over lanes. Converts are cheap
    # (not full-width) and the full-width value is built with a single add.
    row_f = jax.lax.broadcasted_iota(jnp.int32, (row_tile, 1), 0).astype(jnp.float32)
    lane_f = jax.lax.broadcasted_iota(jnp.int32, (1, lane), 1).astype(jnp.float32)

    def gain_of(seg):
        # Clamp dB before the exp so out-of-ramp segments never overflow,
        # then mask them back to unit gain (matches the reference loop bound).
        db = ceil_f + jnp.minimum(seg, n_db_f) * step_f
        return jnp.where(seg < n_db_f, jnp.exp(k * db), jnp.float32(1.0))

    def floor_div(v):
        # Exact floor(v / seg_samples) for integer-valued f32 v < 2^24,
        # with a one-step fixup for reciprocal rounding.
        q = jnp.floor(v * inv_s)
        r = v - q * s
        return q + jnp.where(r >= s, 1.0, 0.0) - jnp.where(r < 0.0, 1.0, 0.0)

    if per_row:
        # seg_samples >= lane: each row crosses at most one segment boundary.
        v = row_f * jnp.float32(lane) + base_rem          # (rt,1) row start (local)
        q = floor_div(v)                                  # (rt,1) local segment idx
        boundary = (q + 1.0) * s - v                      # cols < boundary stay in seg q
        seg_lo = q + base_seg
        g_lo = gain_of(seg_lo)                            # (rt,1): rt exps, EUP
        g_hi = gain_of(seg_lo + 1.0)
        gain = jnp.where(lane_f < boundary, g_lo, g_hi)   # (rt,lane): 1 cmp + 1 select
    else:
        # Fallback for seg_samples < lane: per-element segment index.
        v = row_f * jnp.float32(lane) + base_rem + lane_f  # (rt,lane), one full add
        gain = gain_of(floor_div(v) + base_seg)

    o_ref[...] = (x_ref[...].astype(jnp.float32) * gain).astype(o_ref.dtype)


def vol_transform(x, *, sample_rate=24000, segment_len=0.5,
                  vol_ceil=10, vol_floor=-10, lane=LANE, row_tile=None):
    """JAX/Pallas equivalent of VolTransform.forward (the apply branch).

    x: 1-D waveform, shape (N,), float32 (or bf16).
    """
    # TODO(synk): the Python-side Bernoulli gate `random.random() <= p` has no
    # in-kernel equivalent; we deterministically take the "apply" branch.
    n = x.shape[0]
    if n == 0:
        return x

    seg_samples = int(sample_rate * segment_len)
    segments = n / (segment_len * sample_rate)            # float, as in torch
    db_step = (vol_floor - vol_ceil) / segments
    if db_step == 0.0:
        return x
    # number of dB steps == len(torch.arange(vol_ceil, vol_floor, db_step))
    n_db = int(math.ceil((vol_floor - vol_ceil) / db_step))
    if n_db <= 0:
        return x

    if row_tile is None:
        row_tile = _default_row_tile()

    rows = pl.cdiv(n, lane)
    padded = rows * lane

    # rt: multiple of 8 (or == rows), capped so grid >= 2 whenever rows > 8
    # so the "parallel" grid axis actually shards across v7x's two TensorCores.
    if rows <= 8:
        rt = rows
    else:
        half = -(-((rows + 1) // 2) // 8) * 8             # ceil(rows/2) -> mult of 8
        rt = max(8, min(row_tile, half))
    grid = pl.cdiv(rows, rt)

    per_row = seg_samples >= lane

    # f32-exactness preconditions for the in-kernel index math.
    assert n < (1 << 31), "waveform too long for int32 sample indexing"
    assert rt * lane + 2 * seg_samples < (1 << 24), \
        "block span + segment length must stay below 2^24 for exact f32 math"
    assert n // seg_samples + 2 < (1 << 24), \
        "too many segments for exact f32 segment indices"

    # Per-block decomposition of the absolute base offset, computed on the host
    # and scalar-prefetched to SMEM (avoids in-kernel integer division).
    block_base = np.arange(grid, dtype=np.int64) * (rt * lane)
    base_seg_np = (block_base // seg_samples)
    base_rem_np = block_base - base_seg_np * seg_samples
    base_seg_f = jnp.asarray(base_seg_np.astype(np.float32))
    base_rem_f = jnp.asarray(base_rem_np.astype(np.float32))

    # 2-D lane-aligned view of the waveform; zero-copy when n is lane-aligned.
    if padded != n:
        # TODO(synk): unaligned tails still pay a full-array pad + trailing
        # slice (extra HBM passes); handling the ragged tail fully in-kernel
        # needs a 1-D block layout that is not worth the risk here.
        x2d = jnp.pad(x, (0, padded - n)).reshape(rows, lane)
    else:
        x2d = x.reshape(rows, lane)

    kernel = functools.partial(
        _vol_kernel,
        vol_ceil=float(vol_ceil), db_step=float(db_step), n_db=n_db,
        seg_samples=seg_samples, lane=lane, row_tile=rt, per_row=per_row)

    out2d = pl.pallas_call(
        kernel,
        out_shape=jax.ShapeDtypeStruct((rows, lane), x.dtype),
        grid_spec=pltpu.PrefetchScalarGridSpec(
            num_scalar_prefetch=2,
            grid=(grid,),
            in_specs=[pl.BlockSpec((rt, lane), lambda i, *_: (i, 0))],
            out_specs=pl.BlockSpec((rt, lane), lambda i, *_: (i, 0)),
        ),
        compiler_params=pltpu.CompilerParams(
            dimension_semantics=("parallel",)),
    )(base_seg_f, base_rem_f, x2d)

    out = out2d.reshape(-1)
    if padded != n:
        out = out[:n]
    return out


def _ref_vol(x_np, sample_rate, segment_len, vol_ceil, vol_floor):
    """NumPy reference reproducing the PyTorch forward (apply branch)."""
    x = x_np.copy()
    seg_samples = int(sample_rate * segment_len)
    segments = x.shape[0] / (segment_len * sample_rate)
    step = (vol_floor - vol_ceil) / segments
    step_db = np.arange(vol_ceil, vol_floor, step, dtype=np.float64)
    for i in range(step_db.shape[0]):
        s = i * seg_samples
        e = min((i + 1) * seg_samples, x.shape[0])
        x[s:e] = x[s:e] * np.float32(10.0 ** (0.05 * step_db[i]))
    return x


if __name__ == "__main__":
    key = jax.random.PRNGKey(0)
    k1, k2, k3 = jax.random.split(key, 3)

    # Case 1: per-row fast path (seg_samples=2048 >= lane), lane-aligned
    # (zero-copy 2-D view), grid of 4 blocks.
    n1 = 32 * 1024
    x1 = jax.random.normal(k1, (n1,), dtype=jnp.float32)
    out1 = vol_transform(x1, sample_rate=2048, segment_len=1.0,
                         vol_ceil=10, vol_floor=-10, lane=1024, row_tile=8)
    out1 = jax.block_until_ready(out1)
    ref1 = _ref_vol(np.asarray(x1), 2048, 1.0, 10, -10)
    np.testing.assert_allclose(np.asarray(out1), ref1, rtol=1e-5, atol=1e-5)

    # Case 2: per-element fallback (seg_samples=256 < lane) + non-lane-aligned
    # length (pad path, single partial-row block).
    n2 = 5000
    x2 = jax.random.normal(k2, (n2,), dtype=jnp.float32)
    out2 = vol_transform(x2, sample_rate=1024, segment_len=0.25,
                         vol_ceil=10, vol_floor=-10, lane=1024, row_tile=8)
    out2 = jax.block_until_ready(out2)
    ref2 = _ref_vol(np.asarray(x2), 1024, 0.25, 10, -10)
    np.testing.assert_allclose(np.asarray(out2), ref2, rtol=1e-5, atol=1e-5)

    # Case 3: module defaults (24 kHz, 0.5 s segments -> seg_samples=12000),
    # device-default tiling, mid-row segment boundaries, grid split in 2,
    # unaligned length with a partial final grid block.
    n3 = 72000
    x3 = jax.random.normal(k3, (n3,), dtype=jnp.float32)
    out3 = vol_transform(x3)
    out3 = jax.block_until_ready(out3)
    ref3 = _ref_vol(np.asarray(x3), 24000, 0.5, 10, -10)
    np.testing.assert_allclose(np.asarray(out3), ref3, rtol=1e-5, atol=1e-5)

    print("KERNEL_OK")
</pallas_src>

<mosaic_0001>
module attributes {stable_mosaic.version = 11 : i64} {
  func.func @_vol_kernel(%arg0: i32, %arg1: memref<4xf32, #tpu.memory_space<smem>>, %arg2: memref<4xf32, #tpu.memory_space<smem>>, %arg3: memref<8x1024xf32, #tpu.memory_space<vmem>>, %arg4: memref<8x1024xf32, #tpu.memory_space<vmem>>) attributes {dimension_semantics = [#tpu.dimension_semantics<parallel>], iteration_bounds = array<i64: 4>, scalar_prefetch = 2 : i64, scratch_operands = 0 : i64, tpu.core_type = #tpu.core_type<tc>, window_params = [{transform_indices = @transform_0, window_bounds = array<i64: 8, 1024>}, {transform_indices = @transform_1, window_bounds = array<i64: 8, 1024>}]} {
    %0 = arith.index_cast %arg0 : i32 to index
    %1 = memref.load %arg1[%0] : memref<4xf32, #tpu.memory_space<smem>>
    %2 = arith.index_cast %arg0 : i32 to index
    %3 = memref.load %arg2[%2] : memref<4xf32, #tpu.memory_space<smem>>
    %4 = tpu.iota {dimensions = array<i32: 0>} : vector<8x1xi32>
    %5 = arith.sitofp %4 : vector<8x1xi32> to vector<8x1xf32>
    %6 = tpu.iota {dimensions = array<i32: 1>} : vector<1x1024xi32>
    %7 = arith.sitofp %6 : vector<1x1024xi32> to vector<1x1024xf32>
    %cst = arith.constant 1.024000e+03 : f32
    %8 = vector.broadcast %cst : f32 to vector<8x1xf32>
    %9 = arith.mulf %5, %8 : vector<8x1xf32>
    %10 = vector.broadcast %3 : f32 to vector<8x1xf32>
    %11 = arith.addf %9, %10 : vector<8x1xf32>
    %cst_0 = arith.constant 4.8828125E-4 : f32
    %12 = vector.broadcast %cst_0 : f32 to vector<8x1xf32>
    %13 = arith.mulf %11, %12 : vector<8x1xf32>
    %14 = math.floor %13 : vector<8x1xf32>
    %cst_1 = arith.constant 2.048000e+03 : f32
    %15 = vector.broadcast %cst_1 : f32 to vector<8x1xf32>
    %16 = arith.mulf %14, %15 : vector<8x1xf32>
    %17 = arith.subf %11, %16 : vector<8x1xf32>
    %cst_2 = arith.constant 2.048000e+03 : f32
    %18 = vector.broadcast %cst_2 : f32 to vector<8x1xf32>
    %19 = arith.cmpf oge, %17, %18 : vector<8x1xf32>
    %cst_3 = arith.constant 1.000000e+00 : f32
    %cst_4 = arith.constant 0.000000e+00 : f32
    %20 = vector.broadcast %cst_3 : f32 to vector<8x1xf32>
    %21 = vector.broadcast %cst_4 : f32 to vector<8x1xf32>
    %22 = arith.select %19, %20, %21 : vector<8x1xi1>, vector<8x1xf32>
    %23 = arith.addf %14, %22 : vector<8x1xf32>
    %cst_5 = arith.constant 0.000000e+00 : f32
    %24 = vector.broadcast %cst_5 : f32 to vector<8x1xf32>
    %25 = arith.cmpf olt, %17, %24 : vector<8x1xf32>
    %cst_6 = arith.constant 1.000000e+00 : f32
    %cst_7 = arith.constant 0.000000e+00 : f32
    %26 = vector.broadcast %cst_6 : f32 to vector<8x1xf32>
    %27 = vector.broadcast %cst_7 : f32 to vector<8x1xf32>
    %28 = arith.select %25, %26, %27 : vector<8x1xi1>, vector<8x1xf32>
    %29 = arith.subf %23, %28 : vector<8x1xf32>
    %cst_8 = arith.constant 1.000000e+00 : f32
    %30 = vector.broadcast %cst_8 : f32 to vector<8x1xf32>
    %31 = arith.addf %29, %30 : vector<8x1xf32>
    %cst_9 = arith.constant 2.048000e+03 : f32
    %32 = vector.broadcast %cst_9 : f32 to vector<8x1xf32>
    %33 = arith.mulf %31, %32 : vector<8x1xf32>
    %34 = arith.subf %33, %11 : vector<8x1xf32>
    %35 = vector.broadcast %1 : f32 to vector<8x1xf32>
    %36 = arith.addf %29, %35 : vector<8x1xf32>
    %cst_10 = arith.constant 1.600000e+01 : f32
    %37 = vector.broadcast %cst_10 : f32 to vector<8x1xf32>
    %38 = arith.minimumf %36, %37 : vector<8x1xf32>
    %cst_11 = arith.constant -1.250000e+00 : f32
    %39 = vector.broadcast %cst_11 : f32 to vector<8x1xf32>
    %40 = arith.mulf %38, %39 : vector<8x1xf32>
    %cst_12 = arith.constant 1.000000e+01 : f32
    %41 = vector.broadcast %cst_12 : f32 to vector<8x1xf32>
    %42 = arith.addf %41, %40 : vector<8x1xf32>
    %cst_13 = arith.constant 1.600000e+01 : f32
    %43 = vector.broadcast %cst_13 : f32 to vector<8x1xf32>
    %44 = arith.cmpf olt, %36, %43 : vector<8x1xf32>
    %cst_14 = arith.constant 0.115129255 : f32
    %45 = vector.broadcast %cst_14 : f32 to vector<8x1xf32>
    %46 = arith.mulf %45, %42 : vector<8x1xf32>
    %47 = math.exp %46 : vector<8x1xf32>
    %cst_15 = arith.constant 1.000000e+00 : f32
    %48 = vector.broadcast %cst_15 : f32 to vector<8x1xf32>
    %49 = arith.select %44, %47, %48 : vector<8x1xi1>, vector<8x1xf32>
    %cst_16 = arith.constant 1.000000e+00 : f32
    %50 = vector.broadcast %cst_16 : f32 to vector<8x1xf32>
    %51 = arith.addf %36, %50 : vector<8x1xf32>
    %cst_17 = arith.constant 1.600000e+01 : f32
    %52 = vector.broadcast %cst_17 : f32 to vector<8x1xf32>
    %53 = arith.minimumf %51, %52 : vector<8x1xf32>
    %cst_18 = arith.constant -1.250000e+00 : f32
    %54 = vector.broadcast %cst_18 : f32 to vector<8x1xf32>
    %55 = arith.mulf %53, %54 : vector<8x1xf32>
    %cst_19 = arith.constant 1.000000e+01 : f32
    %56 = vector.broadcast %cst_19 : f32 to vector<8x1xf32>
    %57 = arith.addf %56, %55 : vector<8x1xf32>
    %cst_20 = arith.constant 1.600000e+01 : f32
    %58 = vector.broadcast %cst_20 : f32 to vector<8x1xf32>
    %59 = arith.cmpf olt, %51, %58 : vector<8x1xf32>
    %cst_21 = arith.constant 0.115129255 : f32
    %60 = vector.broadcast %cst_21 : f32 to vector<8x1xf32>
    %61 = arith.mulf %60, %57 : vector<8x1xf32>
    %62 = math.exp %61 : vector<8x1xf32>
    %cst_22 = arith.constant 1.000000e+00 : f32
    %63 = vector.broadcast %cst_22 : f32 to vector<8x1xf32>
    %64 = arith.select %59, %62, %63 : vector<8x1xi1>, vector<8x1xf32>
    %65 = vector.broadcast %7 : vector<1x1024xf32> to vector<8x1024xf32>
    %66 = vector.broadcast %34 : vector<8x1xf32> to vector<8x1024xf32>
    %67 = arith.cmpf olt, %65, %66 : vector<8x1024xf32>
    %68 = vector.shape_cast %49 : vector<8x1xf32> to vector<8x1xf32>
    %69 = vector.broadcast %68 : vector<8x1xf32> to vector<8x1024xf32>
    %70 = vector.shape_cast %64 : vector<8x1xf32> to vector<8x1xf32>
    %71 = vector.broadcast %70 : vector<8x1xf32> to vector<8x1024xf32>
    %72 = arith.select %67, %69, %71 : vector<8x1024xi1>, vector<8x1024xf32>
    %c0 = arith.constant 0 : index
    %c0_23 = arith.constant 0 : index
    %73 = vector.load %arg3[%c0, %c0_23] : memref<8x1024xf32, #tpu.memory_space<vmem>>, vector<8x1024xf32>
    %74 = arith.mulf %73, %72 : vector<8x1024xf32>
    %c0_24 = arith.constant 0 : index
    %c0_25 = arith.constant 0 : index
    %75 = vector.load %arg4[%c0_24, %c0_25] : memref<8x1024xf32, #tpu.memory_space<vmem>>, vector<8x1024xf32>
    tpu.vector_store %arg4[%c0_24, %c0_25], %74 {strides = array<i32>} : memref<8x1024xf32, #tpu.memory_space<vmem>>, vector<8x1024xf32>,
    return
  }
  func.func @transform_0(%arg0: i32, %arg1: memref<4xf32, #tpu.memory_space<smem>>, %arg2: memref<4xf32, #tpu.memory_space<smem>>) -> (i32, i32) {
    %c0_i32 = arith.constant 0 : i32
    %c0_i32_0 = arith.constant 0 : i32
    return %arg0, %c0_i32 : i32, i32
  }
  func.func @transform_1(%arg0: i32, %arg1: memref<4xf32, #tpu.memory_space<smem>>, %arg2: memref<4xf32, #tpu.memory_space<smem>>) -> (i32, i32) {
    %c0_i32 = arith.constant 0 : i32
    %c0_i32_0 = arith.constant 0 : i32
    return %arg0, %c0_i32 : i32, i32
  }
}

</mosaic_0001>

<bundles_post_ra>
// kernel: tpu_custom_call.1
= control target key start
LH: loop header
LB: loop body
LE: loop exit
PB: predicated region body
PF: predicated region fallthrough
CT: control target
= control target key end

     0   :  { %s510_s12 = smov [#allocation3]   ;;  %s756_s0 = inlined_call_operand.hbm [shape: f32[4], index: 0, kind: input, shape index: {}]   ;;  %s757_s2 = inlined_call_operand.hbm [shape: f32[32,1024], index: 2, kind: input, shape index: {}]   ;;  %s758_s3 = inlined_call_operand.hbm [shape: f32[32,1024], index: 3, kind: output, shape index: {}]   ;;  %s759_s1 = inlined_call_operand.vmem [shape: f32[4], index: 1, kind: input, shape index: {}]  }
   0x1   :  { %9 = dma.hbm_to_smem %s756_s0, 16, %s510_s12, [#allocation2] }
   0x2   :  { %s10_s17 = sshll.u32 %s759_s1, 4  ;;  %s11_s17 = int_to_ptr.vmem [resolvable:$true] %s10_s17 }
   0x3   :  { %s402_s18 = scalar_lea.vmem %s11_s17, 16  ;;  %p407_p1 = scmp.lt.s32.totalorder %s11_s17, %s11_s17 }
   0x4   :  { %p403_p0 = scmp.ne.s32.totalorder %s11_s17, %s402_s18  ;;  %p408_p2 = scmp.lt.s32.totalorder %s402_s18, %s402_s18 }
   0x6   :  { %p409_p3 = por %p408_p2, %p407_p1 }
   0x8   :  { %p410_p4 = pnand %p409_p3, %p403_p0 }
   0xa   :  { %413 = shalt.err (!%p410_p4)  }
   0xb   :  { %s511_s19 = smov [#allocation4]  }
   0xc   :  { %13 = dma.vmem_to_smem %s11_s17, 16, %s511_s19, [#allocation2] }
   0xd   :  { %484 = dma.done.wait [#allocation2], 32 }
   0xe   :  { %485 = vsyncadd [#allocation2], 4294967264 }
   0xf   :  { %15 = sfence }
  0x10   :  { %16 = vsyncpa [#allocation6], 0 }
  0x11   :  { %18 = vsyncpa [#allocation6 + $0x1], 0 }
  0x12   :  { %19 = vsyncpa [#allocation7], 0 }
  0x13   :  { %21 = vsyncpa [#allocation7 + $0x1], 0  ;;  %s541_s0 = smov 0   ;;  %s543_s1 = smov 0  }
  0x14   :  { %s545_s20 = smov 0   ;;  %s547_s21 = smov 0  }
  0x15 LB: > { %s562_s22 = sadd.s32 4294967295, %s508_s21   ;;  %s325_s23 = sadd.s32 4294967294, %s508_s21   ;;  %s508_s21 = sphi %s547_s21, %s791_s21   ;;  %s504_s20 = sphi %s545_s20, %s790_s20   ;;  %s500_s1 = sphi %s543_s1, %s789_s1   ;;  %s496_s0 = sphi %s541_s0, %s788_s0  }
  0x16   : > { %s566_s24 = sadd.s32 1, %s508_s21   ;;  %s34_s25 = sadd.s32 1, %s504_s20 }
  0x17   : > { %s31_s26 = ssub.s32 %s508_s21, %s566_s24  ;;  %p41_p5 = scmp.ne.s32.totalorder %s504_s20, %s500_s1 }
  0x18   : > { %p32_p6 = scmp.eq.s32.totalorder %s31_s26, 0  ;;  %p42_p7 = scmp.eq.s32.totalorder %s508_s21, 0 }
  0x19   : > { %p47_p8 = scmp.ne.s32.totalorder %s500_s1, %s496_s0  ;;  %p48_p9 = scmp.eq.s32.totalorder %s562_s22, 0 }
  0x1a   : > { %s578_s27 = scalar_select %p32_p6, %s504_s20, %s34_s25  }
  0x1b   : > { %p580_p10 = por %p42_p7, %p41_p5  ;;  %p584_p11 = por %p48_p9, %p47_p8 }
  0x1c   : > { %p71_p12 = scmp.eq.s32.totalorder %s562_s22, 3  ;;  %p77_p13 = scmp.eq.s32.totalorder %s325_s23, 3 }
  0x1d   : > { %s763_s29 = scalar_select %p584_p11, 1, 0 }
  0x1e   : > { %p353_p0 = scmp.lt.s32.totalorder %s508_s21, 4  ;;  %p590_p1 = por %p71_p12, %p41_p5 }
  0x1f   : > { %p594_p2 = por %p77_p13, %p47_p8  ;;  %s97_s5 = sand.u32 1, %s504_s20  }
  0x20   : > { %s764_s30 = scalar_select %p590_p1, 1, 0 }
  0x21   : > { %s765_s4 = scalar_select %p594_p2, 1, 0 }
  0x22   : > { %s339_s6 = sshll.u32 %s508_s21, 10  ;;  %s328_s7 = sshll.u32 %s97_s5, 6 }
  0x23   : > { %s603_s10 = scalar_lea.hbm %s757_s2, %s339_s6  ;;  %s101_s11 = scalar_lea.vmem [#allocation5], %s328_s7 }
  0x24   : > { %s109_s12 = sshll.u32 %s101_s11, 4  ;;  %p607_p3 = pnand %p353_p0, %p580_p10  ;;  %s611_s12 = int_to_ptr.vmem [resolvable:$true] %s109_s12 }
  0x25   : > { %s98_s14 = scalar_lea.sflag [#allocation6], %s97_s5  ;;  %s414_s15 = scalar_lea.hbm %s603_s10, 1024 }
  0x26   : > { %p415_p6 = scmp.ne.s32.totalorder %s603_s10, %s414_s15  ;;  %p416_p7 = pneg %p607_p3 }
  0x27   : > { %s419_s18 = scalar_lea.hbm %s757_s2, 4096  ;;  %p420_p10 = scmp.lt.s32.totalorder %s603_s10, %s757_s2 }
  0x28   : > { %p417_p8 = pnand %p416_p7, %p415_p6  ;;  %p421_p12 = scmp.lt.s32.totalorder %s419_s18, %s414_s15 }
  0x2a   : > { %p418_p9 = pneg %p417_p8  ;;  %p422_p13 = por %p421_p12, %p420_p10 }
  0x2c   : > { %p423_p0 = pnand %p422_p13, %p418_p9 }
  0x2e   : > { %426 = shalt.err (!%p423_p0)
}
  0x2f   : > { %s427_s25 = scalar_lea.vmem %s611_s12, 1024  ;;  %s512_s26 = smov [#allocation5]  }
  0x30   : > { %p428_p4 = scmp.ne.s32.totalorder %s611_s12, %s427_s25  ;;  %s432_s28 = sshll.u32 %s512_s26, 4  ;;  %s433_s28 = int_to_ptr.vmem [resolvable:$false] %s432_s28 }
  0x31   : > { %s434_s5 = scalar_lea.vmem %s433_s28, 2048  ;;  %p435_p8 = scmp.lt.s32.totalorder %s611_s12, %s433_s28 }
  0x32   : > { %p430_p5 = pnand %p428_p4, %p416_p7  ;;  %p436_p2 = scmp.lt.s32.totalorder %s434_s5, %s427_s25 }
  0x34   : > { %p431_p6 = pneg %p430_p5  ;;  %p437_p1 = por %p436_p2, %p435_p8 }
  0x36   : > { %p438_p11 = pnand %p437_p1, %p431_p6 }
  0x38   : > { %441 = shalt.err (!%p438_p11)
}
  0x39   : > { %348 = dma.hbm_to_vmem [thread:$0]  (!%p607_p3), %s603_s10, 1024, %s611_s12, %s98_s14  }
  0x3a   : > { %p767_p9 = scmp.lt.s32.totalorder %s508_s21, 5  ;;  %p768_p10 = scmp.ge.s32.totalorder %s508_s21, 1 }
  0x3c   : > { %p115_p4 = pnand %p768_p10, %p767_p9 }
  0x3d   : > { %s638_s6 = sand.u32 (!%p115_p4), 1, %s500_s1   ;;  %p769_p11 = scmp.ne.s32.totalorder (!%p115_p4), %s763_s29, 0 }
  0x3e   : > { %118 = sbr.rel (%p115_p4) target bundleno = 140 (0x8c), region = 24  ;;  %s332_s7 = sshll.u32 (!%p115_p4), %s638_s6, 6 }
  0x3f   : > { %s121_s8 = scalar_lea.sflag (!%p115_p4), [#allocation6], %s638_s6  ;;  %s644_s9 = scalar_lea.vmem (!%p115_p4), [#allocation5], %s332_s7 }
  0x43   : > { %487 = dma.done.wait (%p769_p11), %s121_s8, 1024  }
  0x44   : > { %489 = vsyncadd (%p769_p11), %s121_s8, 4294966272  ;;  %v145_v0 = vlaneseq  ;;  %s144_s10 = sld [smem:[#allocation4 + %s562_s22]]  ;;  %v513_v10 = vmov 0.0   ;;  %v216_v50 = vld [vmem:[%s644_s9] sm:$0xff]  ;;  %v217_v55 = vld [vmem:[%s644_s9 + $0x8] sm:$0xff]  ;;  %s340_s29 = sshll.u32 %s562_s22, 10 }
  0x45   : > { %s143_s11 = sld [smem:[#allocation3 + %s562_s22]]  ;;  %v218_v56 = vld [vmem:[%s644_s9 + $0x10] sm:$0xff]  ;;  %v219_v57 = vld [vmem:[%s644_s9 + $0x18] sm:$0xff]  ;;  %v220_v60 = vld [vmem:[%s644_s9 + $0x20] sm:$0xff]  ;;  %s142_s12 = scalar_lea.vmem [#allocation8], %s332_s7 }
  0x46   : > { %v146_v1 = vshrl.u32 %v145_v0, 7  ;;  %v149_v29 = vand.u32 127, %v145_v0  ;;  %s255_s13 = sshll.u32 %s142_s12, 4  ;;  %s714_s15 = scalar_lea.hbm %s758_s3, %s340_s29  ;;  %s716_s13 = int_to_ptr.vmem [resolvable:$true] %s255_s13 }
  0x47   : > { %s241_s16 = scalar_lea.sflag [#allocation7], %s638_s6  ;;  %s442_s17 = scalar_lea.vmem %s716_s13, 1024 }
  0x48   : > { %v147_v2 = vcvt.s32.f32 %v146_v1  ;;  %v150_v31 = vadd.s32 128, %v149_v29  ;;  %v151_v32 = vadd.s32 256, %v149_v29  ;;  %v152_v33 = vadd.s32 384, %v149_v29  ;;  %p443_p1 = scmp.ne.s32.totalorder %s716_s13, %s442_s17  ;;  %p786_p2 = scmp.ne.s32.totalorder %s764_s30, 0 }
  0x49   : > { %v153_v34 = vadd.s32 512, %v149_v29  ;;  %v154_v35 = vadd.s32 640, %v149_v29  ;;  %v155_v36 = vadd.s32 768, %v149_v29  ;;  %v156_v37 = vadd.s32 896, %v149_v29  ;;  %s514_s18 = smov [#allocation8]  }
  0x4a   : > { %v165_v3 = vmul.f32 1024.0, %v147_v2  ;;  %v166_v4 = vstv %s144_s10  ;;  %v157_v38 = vcvt.s32.f32 %v149_v29  ;;  %v158_v40 = vcvt.s32.f32 %v150_v31  ;;  %p444_p3 = pnand %p443_p1, %p786_p2  ;;  %s446_s19 = sshll.u32 %s514_s18, 4  ;;  %s447_s19 = int_to_ptr.vmem [resolvable:$false] %s446_s19 }
  0x4b   : > { %v181_v14 = vstv %s143_s11  ;;  %v159_v41 = vcvt.s32.f32 %v151_v32  ;;  %v160_v42 = vcvt.s32.f32 %v152_v33  ;;  %v161_v43 = vcvt.s32.f32 %v153_v34  ;;  %s448_s23 = scalar_lea.vmem %s447_s19, 2048  ;;  %p449_p7 = scmp.lt.s32.totalorder %s716_s13, %s447_s19 }
  0x4c   : > { %v167_v5 = vadd.f32 %v166_v4, %v165_v3  ;;  %v162_v44 = vcvt.s32.f32 %v154_v35  ;;  %v163_v45 = vcvt.s32.f32 %v155_v36  ;;  %v164_v46 = vcvt.s32.f32 %v156_v37  ;;  %v221_v4 = vld [vmem:[%s644_s9 + $0x28] sm:$0xff]  ;;  %p445_p5 = pneg %p444_p3  ;;  %p450_p12 = scmp.lt.s32.totalorder %s448_s23, %s442_s17 }
  0x4e   : > { %v168_v6 = vmul.f32 0.00048828125, %v167_v5  ;;  %p451_p13 = por %p450_p12, %p449_p7 }
  0x50   : > { %v169_v7 = vfloor.f32 %v168_v6  ;;  %v223_v6 = vld [vmem:[%s644_s9 + $0x38] sm:$0xff]  ;;  %p452_p0 = pnand %p451_p13, %p445_p5 }
  0x52   : > { %v170_v8 = vmul.f32 2048.0, %v169_v7 }
  0x54   : > { %v171_v9 = vsub.f32 %v167_v5, %v170_v8 }
  0x56   : > { %vm172_vm0 = vcmp.ge.f32.partialorder %v171_v9, 2048.0  ;;  %vm175_vm1 = vcmp.lt.f32.partialorder %v171_v9, 0.0 }
  0x57   : > { %v173_v11 = vsel %vm172_vm0, 1.0, %v513_v10  ;;  %v176_v12 = vsel %vm175_vm1, 1.0, %v513_v10 }
  0x58   : > { %v174_v13 = vadd.f32 %v173_v11, %v169_v7 }
  0x5a   : > { %v177_v15 = vsub.f32 %v174_v13, %v176_v12 }
  0x5c   : > { %v182_v16 = vadd.f32 %v181_v14, %v177_v15  ;;  %v178_v28 = vadd.f32 1.0, %v177_v15 }
  0x5e   : > { %v183_v17 = vmin.f32 %v182_v16, 16.0  ;;  %v191_v18 = vadd.f32 1.0, %v182_v16  ;;  %v179_v30 = vmul.f32 2048.0, %v178_v28  ;;  %vm186_vm2 = vcmp.lt.f32.partialorder %v182_v16, 16.0 }
  0x60   : > { %v184_v19 = vmul.f32 -1.25, %v183_v17  ;;  %v192_v20 = vmin.f32 %v191_v18, 16.0  ;;  %v180_v39 = vsub.f32 %v179_v30, %v167_v5  ;;  %vm195_vm3 = vcmp.lt.f32.partialorder %v191_v18, 16.0  ;;  %v222_v5 = vld [vmem:[%s644_s9 + $0x30] sm:$0xff] }
  0x62   : > { %v185_v21 = vadd.f32 10.0, %v184_v19  ;;  %v193_v22 = vmul.f32 -1.25, %v192_v20  ;;  %vm652_vm4 = vcmp.lt.f32.partialorder %v157_v38, %v180_v39  ;;  %vm657_vm5 = vcmp.lt.f32.partialorder %v158_v40, %v180_v39 }
  0x63   : > { %vm661_vm6 = vcmp.lt.f32.partialorder %v159_v41, %v180_v39  ;;  %vm665_vm7 = vcmp.lt.f32.partialorder %v160_v42, %v180_v39  ;;  %vm672_vm8 = vcmp.lt.f32.partialorder %v161_v43, %v180_v39  ;;  %vm677_vm9 = vcmp.lt.f32.partialorder %v162_v44, %v180_v39 }
  0x64   : > { %v187_v23 = vmul.f32 0.115129255, %v185_v21  ;;  %v194_v24 = vadd.f32 10.0, %v193_v22  ;;  %vm681_vm10 = vcmp.lt.f32.partialorder %v163_v45, %v180_v39  ;;  %vm685_vm11 = vcmp.lt.f32.partialorder %v164_v46, %v180_v39 }
  0x66   : > { %v188_v25 = vmul.f32 1.442695, %v187_v23  ;;  %v196_v26 = vmul.f32 0.115129255, %v194_v24 }
  0x68   : > { %390 = vpow2.f32 %v188_v25  ;;  %v197_v27 = vmul.f32 1.442695, %v196_v26 }
  0x6a   : > { %392 = vpow2.f32 %v197_v27 }
  0x75   : > { %v391_v47 = vpop.eup %390 }
  0x76   : > { %v190_v49 = vsel %vm186_vm2, %v391_v47, 1.0 }
  0x77   : > { %v393_v54 = vpop.eup %392 }
  0x78   : > { %v199_v59 = vsel %vm195_vm3, %v393_v54, 1.0 }
  0x79   : > { %v208_v0 = vsel %vm652_vm4, %v190_v49, %v199_v59  ;;  %v209_v1 = vsel %vm657_vm5, %v190_v49, %v199_v59  ;;  %v210_v2 = vsel %vm661_vm6, %v190_v49, %v199_v59  ;;  %v211_v3 = vsel %vm665_vm7, %v190_v49, %v199_v59 }
  0x7a   : > { %v224_v7 = vmul.f32 %v216_v50, %v208_v0  ;;  %v225_v8 = vmul.f32 %v217_v55, %v209_v1  ;;  %v226_v9 = vmul.f32 %v218_v56, %v210_v2  ;;  %v227_v10 = vmul.f32 %v219_v57, %v211_v3 }
  0x7b   : > { %v212_v11 = vsel %vm672_vm8, %v190_v49, %v199_v59  ;;  %v213_v12 = vsel %vm677_vm9, %v190_v49, %v199_v59  ;;  %v214_v13 = vsel %vm681_vm10, %v190_v49, %v199_v59  ;;  %v215_v14 = vsel %vm685_vm11, %v190_v49, %v199_v59 }
  0x7c   : > { %232 = vst [vmem:[%s142_s12] sm:$0xff] %v224_v7  ;;  %233 = vst [vmem:[%s142_s12 + $0x8] sm:$0xff] %v225_v8  ;;  %v228_v15 = vmul.f32 %v220_v60, %v212_v11  ;;  %v229_v16 = vmul.f32 %v221_v4, %v213_v12  ;;  %v230_v17 = vmul.f32 %v222_v5, %v214_v13 }
  0x7d   : > { %234 = vst [vmem:[%s142_s12 + $0x10] sm:$0xff] %v226_v9  ;;  %235 = vst [vmem:[%s142_s12 + $0x18] sm:$0xff] %v227_v10  ;;  %v231_v18 = vmul.f32 %v223_v6, %v215_v14 }
  0x7e   : > { %236 = vst [vmem:[%s142_s12 + $0x20] sm:$0xff] %v228_v15  ;;  %237 = vst [vmem:[%s142_s12 + $0x28] sm:$0xff] %v229_v16 }
  0x7f   : > { %238 = vst [vmem:[%s142_s12 + $0x30] sm:$0xff] %v230_v17  ;;  %239 = vst [vmem:[%s142_s12 + $0x38] sm:$0xff] %v231_v18 }
  0x80   : > { %455 = shalt.err (!%p452_p0)
}
  0x81   : > { %s456_s25 = scalar_lea.hbm %s714_s15, 1024  ;;  %s460_s5 = scalar_lea.hbm %s758_s3, 4096 }
  0x82   : > { %p457_p6 = scmp.ne.s32.totalorder %s714_s15, %s456_s25  ;;  %p461_p10 = scmp.lt.s32.totalorder %s714_s15, %s758_s3 }
  0x83   : > { %p462_p4 = scmp.lt.s32.totalorder %s460_s5, %s456_s25 }
  0x84   : > { %p458_p8 = pnand %p457_p6, %p786_p2 }
  0x85   : > { %p463_p11 = por %p462_p4, %p461_p10 }
  0x86   : > { %p459_p9 = pneg %p458_p8 }
  0x88   : > { %p464_p1 = pnand %p463_p11, %p459_p9 }
  0x8a   : > { %467 = shalt.err (!%p464_p1)
}
  0x8b   : > { %343 = dma.vmem_to_hbm [thread:$0]  (%p786_p2), %s716_s13, 1024, %s714_s15, %s241_s16  }
  0x8c PF: > { %p354_p3 = scmp.ge.s32.totalorder %s508_s21, 2  ;;  %s267_s8 = sand.u32 1, %s496_s0  }
  0x8d   : > { %p787_p5 = scmp.ne.s32.totalorder %s765_s4, 0  ;;  %s268_s9 = scalar_lea.sflag [#allocation7], %s267_s8 }
  0x8f   : > { %p350_p7 = pnand %p354_p3, %p787_p5 }
  0x91   : > { %p351_p12 = pneg %p350_p7 }
  0x93   : > { %491 = dma.done.wait (%p351_p12), %s268_s9, 1024  }
  0x94   : > { %493 = vsyncadd (%p351_p12), %s268_s9, 4294966272  ;;  %p24_p13 = scmp.ge.s32.totalorder %s566_s24, 6   ;;  %s788_s0 = smov %s500_s1 }
  0x95   : > { %s789_s1 = smov %s504_s20  ;;  %s790_s20 = smov %s578_s27 }
  0x96   : > { %s791_s21 = smov %s566_s24  ;;  %26 = sbr.rel (!%p24_p13) target bundleno = 21 (0x15), region = 69 }
  0x9b   :  { %273 = vsyncpa [#allocation6], 1 }
  0x9c   :  { %275 = vsyncpa [#allocation6 + $0x1], 1 }
  0x9d   :  { %276 = vsyncpa [#allocation7], 1 }
  0x9e   :  { %278 = vsyncpa [#allocation7 + $0x1], 1 }

</bundles_post_ra>
